<compile_context>
chip_gen: v7x
topology: tpu7x:2x2x1
jax: 0.10.0
libtpu: 0.0.40
codegen_flags: <defaults>
</compile_context>

<pallas_src>
import functools

import jax
import jax.numpy as jnp
from jax.experimental import pallas as pl
from jax.experimental.pallas import tpu as pltpu


def _round_up(x, n):
    return ((x + n - 1) // n) * n


def _pick_tile(m, max_tile=32768, min_split=8192):
    """Lane-tile size for the big M = B*H*Wf axis (M sits on lanes).

    - m <= min_split: one grid step whose block equals the full array (no
      (8,128) divisibility issue, no ragged tile). Splitting tiny slabs only
      adds per-step overhead.
    - otherwise: >= 2 grid steps (so the 'parallel' conv grid axis can shard
      across v7x's two TensorCores), tile a multiple of 128, capped at
      max_tile (~1 MiB per (8, tile) f32 block -> ~4 MiB double-buffered).
    """
    if m <= min_split:
        return m
    half = -(-m // 2)                       # cdiv(m, 2)
    return min(max_tile, _round_up(half, 128))


# ----------------------------------------------------------------------------
# Fused batch-statistics kernel (one pass over the slab):
#   sum_ref  (2Cin, 1)     : sum over columns of X
#   ssq_ref  (2Cin, 2Cin)  : sum over columns of (x - c)(x - c)^T, where c is
#                            the first tile's per-channel mean (shift point)
#   c_ref    (2Cin, 1)     : c itself (written at step 0, read afterwards)
# Accumulators live in resident output blocks (constant index_map), grid axis
# is "arbitrary" (sequential carry).  Ragged final tile handled by masking.
# ----------------------------------------------------------------------------
def _stats_kernel(xt_ref, sum_ref, ssq_ref, c_ref, *, m_total, tile_m, ragged):
    i = pl.program_id(0)
    x = xt_ref[...].astype(jnp.float32)                       # (2Cin, tile_m)

    if ragged:
        col = jax.lax.broadcasted_iota(jnp.int32, x.shape, 1)
        valid = (i * tile_m + col) < m_total
        xv = jnp.where(valid, x, 0.0)
        n_t = jnp.minimum(m_total - i * tile_m, tile_m).astype(jnp.float32)
    else:
        valid = None
        xv = x
        n_t = jnp.float32(tile_m)

    s_t = jnp.sum(xv, axis=1, keepdims=True)                  # (2Cin, 1)

    @pl.when(i == 0)
    def _():
        sum_ref[...] = jnp.zeros_like(sum_ref)
        ssq_ref[...] = jnp.zeros_like(ssq_ref)
        c_ref[...] = s_t / n_t          # tile-0 mean ~ global mean (shift pt)

    xc = x - c_ref[...]
    if ragged:
        xc = jnp.where(valid, xc, 0.0)

    sum_ref[...] += s_t
    ssq_ref[...] += jnp.dot(xc, xc.T, preferred_element_type=jnp.float32)


def _batch_stats(xt, *, tile_m):
    """xt: (2Cin, M).  Returns (sum(2Cin,1), shifted-scatter(2Cin,2Cin), c(2Cin,1))."""
    cin2, m = xt.shape
    num_tiles = pl.cdiv(m, tile_m)
    kernel = functools.partial(_stats_kernel, m_total=m, tile_m=tile_m,
                               ragged=(num_tiles * tile_m != m))
    return pl.pallas_call(
        kernel,
        out_shape=(
            jax.ShapeDtypeStruct((cin2, 1), jnp.float32),
            jax.ShapeDtypeStruct((cin2, cin2), jnp.float32),
            jax.ShapeDtypeStruct((cin2, 1), jnp.float32),
        ),
        grid_spec=pltpu.PrefetchScalarGridSpec(
            num_scalar_prefetch=0,
            grid=(num_tiles,),
            in_specs=[pl.BlockSpec((cin2, tile_m), lambda i: (0, i))],
            out_specs=(
                pl.BlockSpec((cin2, 1), lambda i: (0, 0)),
                pl.BlockSpec((cin2, cin2), lambda i: (0, 0)),
                pl.BlockSpec((cin2, 1), lambda i: (0, 0)),
            ),
        ),
        compiler_params=pltpu.CompilerParams(
            dimension_semantics=("arbitrary",),        # carried accumulators
            vmem_limit_bytes=32 * 1024 * 1024,
        ),
    )(xt)


# ----------------------------------------------------------------------------
# Fused streaming kernel:  Y^T = relu( W' @ X^T + shift )
#   W'     (2Cout, 2Cin)   : BN scale already folded in (resident)
#   X^T    (2Cin, tile_m)  : M on lanes (lane-dense, unmasked full-lane vst)
#   shift  (2Cout, 1)      : per-output-channel BN shift (resident)
# ----------------------------------------------------------------------------
def _conv_bn_relu_kernel(w_ref, xt_ref, shift_ref, o_ref):
    y = jnp.dot(w_ref[...], xt_ref[...], preferred_element_type=jnp.float32)
    o_ref[...] = jnp.maximum(y + shift_ref[...], 0.0).astype(o_ref.dtype)


def _conv_bn_relu_t(xt, w_eff, shift, *, tile_m):
    """xt: (2Cin, M), w_eff: (2Cout, 2Cin), shift: (2Cout,). Returns (2Cout, M) f32."""
    cin2, m = xt.shape
    cout2 = w_eff.shape[0]
    num_tiles = pl.cdiv(m, tile_m)
    return pl.pallas_call(
        _conv_bn_relu_kernel,
        out_shape=jax.ShapeDtypeStruct((cout2, m), jnp.float32),
        grid_spec=pltpu.PrefetchScalarGridSpec(
            num_scalar_prefetch=0,
            grid=(num_tiles,),
            in_specs=[
                pl.BlockSpec((cout2, cin2), lambda i: (0, 0)),
                pl.BlockSpec((cin2, tile_m), lambda i: (0, i)),
                pl.BlockSpec((cout2, 1), lambda i: (0, 0)),
            ],
            # Ragged final block: OOB stores are dropped, so no pad/slice pass.
            out_specs=pl.BlockSpec((cout2, tile_m), lambda i: (0, i)),
        ),
        compiler_params=pltpu.CompilerParams(
            dimension_semantics=("parallel",),     # no carry -> megacore OK
            vmem_limit_bytes=32 * 1024 * 1024,
        ),
    )(w_eff.astype(xt.dtype), xt, shift[:, None])


# ----------------------------------------------------------------------------
# FourierUnit forward (groups=1, no spectral_pos_encoding, no SE, no scaling,
# ffc3d=False, fft_norm='ortho') — matches the PyTorch defaults.
# ----------------------------------------------------------------------------
def _fourier_unit_forward(x, conv_w, bn_gamma, bn_beta, eps=1e-5, *,
                          stream_bf16=False, max_tile=32768, min_split=8192):
    """x: (B, Cin, H, W).  conv_w: (2*Cout, 2*Cin) 1x1 conv weight (no bias)."""
    b, c, h, w = x.shape
    cout2 = conv_w.shape[0]
    conv_w = conv_w.astype(jnp.float32)

    # TODO(synk): rfft2 / irfft2 have no Pallas TPU primitive; they stay in XLA.
    ffted = jnp.fft.rfft2(x, norm="ortho")                     # (B, C, H, Wf)
    wf = ffted.shape[-1]
    m = b * h * wf

    # (B,C,H,Wf) complex -> (2C, M) with channels interleaved [re0,im0,re1,...]
    # exactly like the PyTorch view, as ONE transpose+reshape pass, M lane-dense.
    stacked = jnp.stack((jnp.real(ffted), jnp.imag(ffted)), axis=2)  # (B,C,2,H,Wf)
    xt = jnp.transpose(stacked, (1, 2, 0, 3, 4)).reshape(2 * c, m)
    xt = xt.astype(jnp.bfloat16 if stream_bf16 else jnp.float32)

    tile_m = _pick_tile(m, max_tile=max_tile, min_split=min_split)

    # ---- training-mode BatchNorm batch statistics (one fused Pallas pass) ---
    # mean(Y) = W @ mean(X); var(Y) = diag(W cov(X) W^T)  (exact for 1x1 conv).
    sum_x, ssq, c0 = _batch_stats(xt, tile_m=tile_m)
    n = jnp.float32(m)
    mean_x = sum_x[:, 0] / n
    d = mean_x - c0[:, 0]                      # global mean - shift point (tiny)
    cov = (ssq - n * jnp.outer(d, d)) / n      # centered scatter / N  (biased)
    mean_y = conv_w @ mean_x                                   # (2Cout,)
    var_y = jnp.einsum("oi,ij,oj->o", conv_w, cov, conv_w)
    var_y = jnp.maximum(var_y, 0.0)
    scale = bn_gamma / jnp.sqrt(var_y + eps)
    shift = bn_beta - mean_y * scale
    w_eff = scale[:, None] * conv_w            # fold BN scale into the 8x8 weight

    # ---- fused conv1x1 + BN affine + ReLU (single streaming Pallas pass) ----
    zt = _conv_bn_relu_t(xt, w_eff, shift, tile_m=tile_m)      # (2Cout, M) f32

    # (2Cout, M) -> complex (B, Cout, H, Wf)
    z = zt.reshape(cout2 // 2, 2, b, h, wf)
    z_c = jax.lax.complex(z[:, 0], z[:, 1])                    # (Cout, B, H, Wf)
    z_c = jnp.transpose(z_c, (1, 0, 2, 3))                     # (B, Cout, H, Wf)
    out = jnp.fft.irfft2(z_c, s=(h, w), norm="ortho")          # (B, Cout, H, W)
    return out.astype(x.dtype)


fourier_unit_forward = jax.jit(
    _fourier_unit_forward,
    static_argnames=("stream_bf16", "max_tile", "min_split"))


# ----------------------------------------------------------------------------
# Pure-JAX reference (same semantics) for the sanity check.
# ----------------------------------------------------------------------------
def fourier_unit_reference(x, conv_w, bn_gamma, bn_beta, eps=1e-5):
    b, c, h, w = x.shape
    ffted = jnp.fft.rfft2(x, norm="ortho")
    wf = ffted.shape[-1]
    stacked = jnp.stack((jnp.real(ffted), jnp.imag(ffted)), axis=2)
    stacked = stacked.reshape(b, 2 * c, h, wf).astype(jnp.float32)
    y = jnp.einsum("oi,bihw->bohw", conv_w, stacked)           # 1x1 conv
    mean = jnp.mean(y, axis=(0, 2, 3), keepdims=True)          # train-mode BN
    var = jnp.mean((y - mean) ** 2, axis=(0, 2, 3), keepdims=True)
    y = (y - mean) / jnp.sqrt(var + eps)
    y = y * bn_gamma[None, :, None, None] + bn_beta[None, :, None, None]
    y = jnp.maximum(y, 0.0)
    cout2 = conv_w.shape[0]
    y = y.reshape(b, cout2 // 2, 2, h, wf)
    y_c = jax.lax.complex(y[:, :, 0], y[:, :, 1])
    return jnp.fft.irfft2(y_c, s=(h, w), norm="ortho").astype(x.dtype)


if __name__ == "__main__":
    key = jax.random.PRNGKey(0)
    B, C_IN, C_OUT, H, W = 2, 4, 4, 16, 16

    k_x, k_w = jax.random.split(key)
    x = jax.random.normal(k_x, (B, C_IN, H, W), dtype=jnp.float32)

    # Deterministic parameter init (synthetic, not a checkpoint load).
    conv_w = 0.1 * jax.random.normal(
        k_w, (2 * C_OUT, 2 * C_IN), dtype=jnp.float32)   # 1x1 conv weight, no bias
    bn_gamma = jnp.ones((2 * C_OUT,), jnp.float32)        # BatchNorm2d default init
    bn_beta = jnp.zeros((2 * C_OUT,), jnp.float32)

    ref = jax.block_until_ready(
        fourier_unit_reference(x, conv_w, bn_gamma, bn_beta))

    # Default path (single full-width lane tile at this size).
    out = jax.block_until_ready(
        fourier_unit_forward(x, conv_w, bn_gamma, bn_beta))
    assert out.shape == (B, C_OUT, H, W), out.shape
    assert jnp.allclose(out, ref, rtol=1e-4, atol=1e-4), (
        float(jnp.max(jnp.abs(out - ref))))

    # Force the multi-tile path (128-lane tiles, ragged final block) to
    # exercise the accumulator / masking / dropped-OOB-store logic.
    out_tiled = jax.block_until_ready(
        fourier_unit_forward(x, conv_w, bn_gamma, bn_beta,
                             max_tile=128, min_split=128))
    assert jnp.allclose(out_tiled, ref, rtol=1e-4, atol=1e-4), (
        float(jnp.max(jnp.abs(out_tiled - ref))))

    print("KERNEL_OK")
</pallas_src>

<mosaic_0001>
module attributes {stable_mosaic.version = 11 : i64} {
  func.func @_conv_bn_relu_kernel(%arg0: i32, %arg1: memref<8x8xf32, #tpu.memory_space<vmem>>, %arg2: memref<8x288xf32, #tpu.memory_space<vmem>>, %arg3: memref<8x1xf32, #tpu.memory_space<vmem>>, %arg4: memref<8x288xf32, #tpu.memory_space<vmem>>) attributes {dimension_semantics = [#tpu.dimension_semantics<parallel>], iteration_bounds = array<i64: 1>, scalar_prefetch = 0 : i64, scratch_operands = 0 : i64, tpu.core_type = #tpu.core_type<tc>, window_params = [{pipeline_mode = #tpu.pipeline_mode<synchronous>, transform_indices = @transform_0, window_bounds = array<i64: 8, 8>}, {transform_indices = @transform_1, window_bounds = array<i64: 8, 288>}, {pipeline_mode = #tpu.pipeline_mode<synchronous>, transform_indices = @transform_2, window_bounds = array<i64: 8, 1>}, {transform_indices = @transform_3, window_bounds = array<i64: 8, 288>}]} {
    %c0 = arith.constant 0 : index
    %c0_0 = arith.constant 0 : index
    %0 = vector.load %arg1[%c0, %c0_0] : memref<8x8xf32, #tpu.memory_space<vmem>>, vector<8x8xf32>
    %c0_1 = arith.constant 0 : index
    %c0_2 = arith.constant 0 : index
    %1 = vector.load %arg2[%c0_1, %c0_2] : memref<8x288xf32, #tpu.memory_space<vmem>>, vector<8x288xf32>
    %cst = arith.constant dense<0.000000e+00> : vector<8x288xf32>
    %2 = tpu.matmul %0, %1, %cst {dimension_numbers = #tpu.dot_dimension_numbers<[1], [0], [0], [1], [0, 0, 1, 1], [], []>} : vector<8x8xf32>, vector<8x288xf32>, vector<8x288xf32> -> vector<8x288xf32>
    %c0_3 = arith.constant 0 : index
    %c0_4 = arith.constant 0 : index
    %3 = vector.load %arg3[%c0_3, %c0_4] : memref<8x1xf32, #tpu.memory_space<vmem>>, vector<8x1xf32>
    %4 = vector.broadcast %3 : vector<8x1xf32> to vector<8x288xf32>
    %5 = arith.addf %2, %4 : vector<8x288xf32>
    %cst_5 = arith.constant 0.000000e+00 : f32
    %6 = vector.broadcast %cst_5 : f32 to vector<8x288xf32>
    %7 = arith.maximumf %5, %6 : vector<8x288xf32>
    %c0_6 = arith.constant 0 : index
    %c0_7 = arith.constant 0 : index
    %8 = vector.load %arg4[%c0_6, %c0_7] : memref<8x288xf32, #tpu.memory_space<vmem>>, vector<8x288xf32>
    tpu.vector_store %arg4[%c0_6, %c0_7], %7 {strides = array<i32>} : memref<8x288xf32, #tpu.memory_space<vmem>>, vector<8x288xf32>,
    return
  }
  func.func @transform_0(%arg0: i32) -> (i32, i32) {
    %c0_i32 = arith.constant 0 : i32
    %c0_i32_0 = arith.constant 0 : i32
    %c0_i32_1 = arith.constant 0 : i32
    return %c0_i32, %c0_i32_0 : i32, i32
  }
  func.func @transform_1(%arg0: i32) -> (i32, i32) {
    %c0_i32 = arith.constant 0 : i32
    %c0_i32_0 = arith.constant 0 : i32
    return %c0_i32, %arg0 : i32, i32
  }
  func.func @transform_2(%arg0: i32) -> (i32, i32) {
    %c0_i32 = arith.constant 0 : i32
    %c0_i32_0 = arith.constant 0 : i32
    %c0_i32_1 = arith.constant 0 : i32
    return %c0_i32, %c0_i32_0 : i32, i32
  }
  func.func @transform_3(%arg0: i32) -> (i32, i32) {
    %c0_i32 = arith.constant 0 : i32
    %c0_i32_0 = arith.constant 0 : i32
    return %c0_i32, %arg0 : i32, i32
  }
}

module attributes {stable_mosaic.version = 11 : i64} {
  func.func @_stats_kernel(%arg0: i32, %arg1: memref<8x288xf32, #tpu.memory_space<vmem>>, %arg2: memref<8x1xf32, #tpu.memory_space<vmem>>, %arg3: memref<8x8xf32, #tpu.memory_space<vmem>>, %arg4: memref<8x1xf32, #tpu.memory_space<vmem>>) attributes {dimension_semantics = [#tpu.dimension_semantics<arbitrary>], iteration_bounds = array<i64: 1>, scalar_prefetch = 0 : i64, scratch_operands = 0 : i64, tpu.core_type = #tpu.core_type<tc>, window_params = [{transform_indices = @transform_0, window_bounds = array<i64: 8, 288>}, {pipeline_mode = #tpu.pipeline_mode<synchronous>, transform_indices = @transform_1, window_bounds = array<i64: 8, 1>}, {pipeline_mode = #tpu.pipeline_mode<synchronous>, transform_indices = @transform_2, window_bounds = array<i64: 8, 8>}, {pipeline_mode = #tpu.pipeline_mode<synchronous>, transform_indices = @transform_3, window_bounds = array<i64: 8, 1>}]} {
    %c0 = arith.constant 0 : index
    %c0_0 = arith.constant 0 : index
    %0 = vector.load %arg1[%c0, %c0_0] : memref<8x288xf32, #tpu.memory_space<vmem>>, vector<8x288xf32>
    %cst = arith.constant dense<0.000000e+00> : vector<8xf32>
    %1 = vector.multi_reduction <add>, %0, %cst [1] : vector<8x288xf32> to vector<8xf32>
    %2 = vector.shape_cast %1 : vector<8xf32> to vector<8x1xf32>
    %c0_i32 = arith.constant 0 : i32
    %3 = arith.cmpi eq, %arg0, %c0_i32 : i32
    %4 = arith.extui %3 : i1 to i32
    %cst_1 = arith.constant 2.880000e+02 : f32
    %c0_i32_2 = arith.constant 0 : i32
    %5 = arith.cmpi ne, %4, %c0_i32_2 : i32
    scf.if %5 {
      %cst_14 = arith.constant 0.000000e+00 : f32
      %17 = vector.broadcast %cst_14 : f32 to vector<8x1xf32>
      %c0_15 = arith.constant 0 : index
      %c0_16 = arith.constant 0 : index
      %18 = vector.load %arg2[%c0_15, %c0_16] : memref<8x1xf32, #tpu.memory_space<vmem>>, vector<8x1xf32>
      tpu.vector_store %arg2[%c0_15, %c0_16], %17 {strides = array<i32>} : memref<8x1xf32, #tpu.memory_space<vmem>>, vector<8x1xf32>,
      %cst_17 = arith.constant 0.000000e+00 : f32
      %19 = vector.broadcast %cst_17 : f32 to vector<8x8xf32>
      %c0_18 = arith.constant 0 : index
      %c0_19 = arith.constant 0 : index
      %20 = vector.load %arg3[%c0_18, %c0_19] : memref<8x8xf32, #tpu.memory_space<vmem>>, vector<8x8xf32>
      tpu.vector_store %arg3[%c0_18, %c0_19], %19 {strides = array<i32>} : memref<8x8xf32, #tpu.memory_space<vmem>>, vector<8x8xf32>,
      %21 = vector.broadcast %cst_1 : f32 to vector<8x1xf32>
      %22 = arith.divf %2, %21 : vector<8x1xf32>
      %c0_20 = arith.constant 0 : index
      %c0_21 = arith.constant 0 : index
      %23 = vector.load %arg4[%c0_20, %c0_21] : memref<8x1xf32, #tpu.memory_space<vmem>>, vector<8x1xf32>
      tpu.vector_store %arg4[%c0_20, %c0_21], %22 {strides = array<i32>} : memref<8x1xf32, #tpu.memory_space<vmem>>, vector<8x1xf32>,
    } else {
    }
    %c0_3 = arith.constant 0 : index
    %c0_4 = arith.constant 0 : index
    %6 = vector.load %arg4[%c0_3, %c0_4] : memref<8x1xf32, #tpu.memory_space<vmem>>, vector<8x1xf32>
    %7 = vector.broadcast %6 : vector<8x1xf32> to vector<8x288xf32>
    %8 = arith.subf %0, %7 : vector<8x288xf32>
    %c0_5 = arith.constant 0 : index
    %c0_6 = arith.constant 0 : index
    %9 = vector.load %arg2[%c0_5, %c0_6] : memref<8x1xf32, #tpu.memory_space<vmem>>, vector<8x1xf32>
    %10 = arith.addf %9, %2 : vector<8x1xf32>
    %c0_7 = arith.constant 0 : index
    %c0_8 = arith.constant 0 : index
    %11 = vector.load %arg2[%c0_7, %c0_8] : memref<8x1xf32, #tpu.memory_space<vmem>>, vector<8x1xf32>
    tpu.vector_store %arg2[%c0_7, %c0_8], %10 {strides = array<i32>} : memref<8x1xf32, #tpu.memory_space<vmem>>, vector<8x1xf32>,
    %c0_9 = arith.constant 0 : index
    %c0_10 = arith.constant 0 : index
    %12 = vector.load %arg3[%c0_9, %c0_10] : memref<8x8xf32, #tpu.memory_space<vmem>>, vector<8x8xf32>
    %13 = tpu.transpose %8, [1, 0] : vector<8x288xf32> -> vector<288x8xf32>
    %cst_11 = arith.constant dense<0.000000e+00> : vector<8x8xf32>
    %14 = tpu.matmul %8, %13, %cst_11 {dimension_numbers = #tpu.dot_dimension_numbers<[1], [0], [0], [1], [0, 0, 1, 1], [], []>} : vector<8x288xf32>, vector<288x8xf32>, vector<8x8xf32> -> vector<8x8xf32>
    %15 = arith.addf %12, %14 : vector<8x8xf32>
    %c0_12 = arith.constant 0 : index
    %c0_13 = arith.constant 0 : index
    %16 = vector.load %arg3[%c0_12, %c0_13] : memref<8x8xf32, #tpu.memory_space<vmem>>, vector<8x8xf32>
    tpu.vector_store %arg3[%c0_12, %c0_13], %15 {strides = array<i32>} : memref<8x8xf32, #tpu.memory_space<vmem>>, vector<8x8xf32>,
    return
  }
  func.func @transform_0(%arg0: i32) -> (i32, i32) {
    %c0_i32 = arith.constant 0 : i32
    %c0_i32_0 = arith.constant 0 : i32
    return %c0_i32, %arg0 : i32, i32
  }
  func.func @transform_1(%arg0: i32) -> (i32, i32) {
    %c0_i32 = arith.constant 0 : i32
    %c0_i32_0 = arith.constant 0 : i32
    %c0_i32_1 = arith.constant 0 : i32
    return %c0_i32, %c0_i32_0 : i32, i32
  }
  func.func @transform_2(%arg0: i32) -> (i32, i32) {
    %c0_i32 = arith.constant 0 : i32
    %c0_i32_0 = arith.constant 0 : i32
    %c0_i32_1 = arith.constant 0 : i32
    return %c0_i32, %c0_i32_0 : i32, i32
  }
  func.func @transform_3(%arg0: i32) -> (i32, i32) {
    %c0_i32 = arith.constant 0 : i32
    %c0_i32_0 = arith.constant 0 : i32
    %c0_i32_1 = arith.constant 0 : i32
    return %c0_i32, %c0_i32_0 : i32, i32
  }
}

</mosaic_0001>

<bundles_post_ra>
// kernel: sub.7
= control target key start
LH: loop header
LB: loop body
LE: loop exit
PB: predicated region body
PF: predicated region fallthrough
CT: control target
= control target key end

     0   :  { %s34_s0 = inlined_call_operand.vmem [shape: f32[8], index: 0, kind: input, shape index: {}]   ;;  %s35_s1 = inlined_call_operand.vmem [shape: f32[8], index: 1, kind: input, shape index: {}]   ;;  %s36_s2 = inlined_call_operand.vmem [shape: f32[8], index: 2, kind: output, shape index: {}]  }
   0x1   :  { %v3_v0 = vld [vmem:[%s34_s0] sm:$0x1] }
   0x2   :  { %v4_v1 = vld [vmem:[%s35_s1] sm:$0x1] }
   0x3   :  { %v7_v2 = vsub.f32 %v3_v0, %v4_v1 }
   0x5   :  { %9 = vst [vmem:[%s36_s2] sm:$0x1] %v7_v2 }

// kernel: _fourier_unit_forward.3
= control target key start
LH: loop header
LB: loop body
LE: loop exit
PB: predicated region body
PF: predicated region fallthrough
CT: control target
= control target key end

     0   :  { %v193_v1 = vmov 0.0   ;;  %vm24_vm0 = vcmask 64512   ;;  %vm194_vm1 = vmmov 0   ;;  %v195_v6 = vmov 0   ;;  %s240_s1 = inlined_call_operand.vmem [shape: f32[8,288], index: 1, kind: input, shape index: {}]   ;;  %s241_s0 = inlined_call_operand.vmem [shape: f32[8,8], index: 0, kind: input, shape index: {}]   ;;  %s242_s2 = inlined_call_operand.vmem [shape: f32[8,1], index: 2, kind: input, shape index: {}]   ;;  %s243_s3 = inlined_call_operand.vmem [shape: f32[8,288], index: 3, kind: output, shape index: {}]  }
   0x1   :  { %v16_v0 = vld [vmem:[%s240_s1 + $0x8] sm:$0xff]  ;;  %184 = vmatprep.subr.mxu1 %v193_v1  ;;  %v15_v2 = vld [vmem:[%s240_s1] sm:$0xff]  ;;  %92 = vmatprep.mubr.f32.mxu0 %v193_v1  ;;  %v17_v3 = vld [vmem:[%s240_s1 + $0x10] sm:$0xff]  ;;  %vm174_vm2 = vcmask 261120  }
   0x2   :  { %28 = vmatprep.subr.mxu0 %v16_v0  ;;  %185 = vmatpush3.msra.mxu1 %v17_v3  ;;  %v14_v4 = vld [vmem:[%s241_s0] sm:$0xff] }
   0x3   :  { %29 = vmatpush1.msra.mxu0 %v15_v2  ;;  %186 = vmatprep.mubr.msk.f32.mxu1 %vm194_vm1, %v193_v1  ;;  %v18_v5 = vld [vmem:[%s242_s2] sm:$0xff] }
   0x4   :  { %180 = vmatmul.mubr.msk.f32.vlgmr.msra.gmra.mrb[0].mxu0 %vm24_vm0, %v14_v4  ;;  %187 = vmatmul.mubr.msk.f32.vlgmr.msra.gmra.mrb[0].mxu1 %vm24_vm0, %v14_v4 }
   0x5   :  { %192 = vset.pattern.permute.xlu0 %v195_v6 }
   0x6   :  { %21 = vperm.xlu0 %192, %v18_v5  }
  0x85   :  { %v22_v7 = vpop.permute.xlu0 %21 }
  0xd7   :  { %v94_v8 = vpop.f32.mrb[0].mxu0  ;;  %v165_v9 = vpop.f32.mrb[0].mxu1 }
  0xd8   :  { %v95_v10 = vadd.f32 %v94_v8, %v22_v7  ;;  %v166_v11 = vadd.f32 %v165_v9, %v22_v7  ;;  %v96_v12 = vpop.f32.mrb[1].mxu0  ;;  %v188_v13 = vpop.f32.mrb[1].mxu1 }
  0xd9   :  { %v97_v14 = vadd.f32 %v96_v12, %v22_v7 }
  0xda   :  { %v169_v15 = vmax.f32 %v95_v10, 0.0  ;;  %v171_v16 = vmax.f32 %v166_v11, 0.0 }
  0xdb   :  { %v170_v17 = vmax.f32 %v97_v14, 0.0 }
  0xdc   :  { %172 = vst [vmem:[%s243_s3] sm:$0xff] %v169_v15  ;;  %175 = vst.msk [vmem:[%s243_s3 + $0x10] sm:$0xff] %vm174_vm2, %v171_v16 }
  0xdd   :  { %173 = vst [vmem:[%s243_s3 + $0x8] sm:$0xff] %v170_v17 }

// kernel: _fourier_unit_forward.2
= control target key start
LH: loop header
LB: loop body
LE: loop exit
PB: predicated region body
PF: predicated region fallthrough
CT: control target
= control target key end

     0   :  { %vm15_vm0 = vcmask 261120   ;;  %vm24_vm1 = vcmask 7168   ;;  %v216_v3 = vmov 0.0   ;;  %v217_v7 = vmov 0   ;;  %s278_s0 = inlined_call_operand.vmem [shape: f32[8,288], index: 0, kind: input, shape index: {}]   ;;  %s279_s1 = inlined_call_operand.vmem [shape: f32[8,1], index: 1, kind: output, shape index: {0}]   ;;  %s280_s3 = inlined_call_operand.vmem [shape: f32[8,1], index: 3, kind: output, shape index: {2}]   ;;  %s281_s2 = inlined_call_operand.vmem [shape: f32[8,8], index: 2, kind: output, shape index: {1}]  }
   0x1   :  { %v11_v0 = vld [vmem:[%s278_s0] sm:$0xff]  ;;  %v12_v1 = vld [vmem:[%s278_s0 + $0x8] sm:$0xff]  ;;  %v13_v2 = vld [vmem:[%s278_s0 + $0x10] sm:$0xff]  ;;  %25 = vst.msk [vmem:[%s279_s1] sm:$0xff] %vm24_vm1, %v216_v3  ;;  %207 = vmatprep.subr.mxu1 %v216_v3  ;;  %215 = vset.pattern.permute.xlu0 %v217_v7  ;;  %vm218_vm2 = vmmov 0   ;;  %vm26_vm3 = vcmask 64512  }
   0x2   :  { %v14_v4 = vadd.f32 %v12_v1, %v11_v0  ;;  %v16_v5 = vsel %vm15_vm0, %v13_v2, 0.0  ;;  %209 = vmatprep.mubr.msk.f32.mxu1 %vm218_vm2, %v216_v3  ;;  %27 = vst.msk [vmem:[%s281_s2] sm:$0xff] %vm26_vm3, %v216_v3 }
   0x4   :  { %v17_v6 = vadd.f32 %v16_v5, %v14_v4 }
   0x6   :  { %18 = vadd.xlane.f32.xlu0 %v17_v6 }
   0x8   :  { %v40_v8 = vld [vmem:[%s279_s1] sm:$0xff] }
   0x9   :  { %v44_v18 = vld [vmem:[%s281_s2] sm:$0xff] }
  0x93   :  { %v19_v9 = vpop.xlane.xlu0 %18 }
  0x94   :  { %v29_v10 = vmul.f32 0.0034722222, %v19_v9  ;;  %v41_v11 = vadd.f32 %v40_v8, %v19_v9 }
  0x96   :  { %43 = vst.msk [vmem:[%s279_s1] sm:$0xff] %vm24_vm1, %v41_v11  ;;  %30 = vst.msk [vmem:[%s280_s3] sm:$0xff] %vm24_vm1, %v29_v10 }
  0x9d   :  { %v31_v12 = vld [vmem:[%s280_s3] sm:$0xff] }
  0x9e   :  { %34 = vperm.xlu0 %215, %v31_v12  }
 0x11d   :  { %v35_v13 = vpop.permute.xlu0 %34 }
 0x11e   :  { %v39_v14 = vsub.f32 %v13_v2, %v35_v13  ;;  %v38_v15 = vsub.f32 %v12_v1, %v35_v13  ;;  %v37_v16 = vsub.f32 %v11_v0, %v35_v13 }
 0x120   :  { %48 = vmatprep.subr.mxu0 %v38_v15  ;;  %112 = vmatprep.mubr.f32.mxu0 %v38_v15 }
 0x121   :  { %208 = vmatpush3.xpose.msk.msra.mxu1 %vm15_vm0, %v39_v14  ;;  %49 = vmatpush1.xpose.msra.mxu0 %v37_v16 }
 0x124   :  { %210 = vmatmul.mubr.msk.f32.vlgmr.msra.gmra.mrb[0].mxu1 %vm15_vm0, %v39_v14  ;;  %113 = vmatmul.mubr.f32.vlgmr.msra.gmra.mrb[0].mxu0 %v37_v16 }
 0x1f7   :  { %v184_v17 = vpop.f32.mrb[0].mxu1  ;;  %v114_v19 = vpop.f32.mrb[0].mxu0 }
 0x1f8   :  { %v185_v20 = vadd.f32 %v184_v17, %v114_v19  ;;  %v211_v21 = vpop.f32.mrb[1].mxu1  ;;  %v116_v22 = vpop.f32.mrb[1].mxu0 }
 0x1fa   :  { %v188_v23 = vadd.f32 %v185_v20, %v44_v18 }
 0x1fc   :  { %190 = vst.msk [vmem:[%s281_s2] sm:$0xff] %vm26_vm3, %v188_v23 }

// kernel: reverse.0
= control target key start
LH: loop header
LB: loop body
LE: loop exit
PB: predicated region body
PF: predicated region fallthrough
CT: control target
= control target key end

     0   :  { %v71_v3 = vlaneseq  ;;  %v64_v9 = vld [vmem:[#allocation0 + $0x7] ss:$-1 sm:$0xff]  ;;  %v78_v12 = vld [vmem:[#allocation0 + $0x17] ss:$-1 sm:$0xff]  ;;  %s329_s0 = inlined_call_operand.vmem [shape: f32[2,4,16,7], index: 0, kind: input, shape index: {}]   ;;  %s330_s1 = inlined_call_operand.vmem [shape: f32[2,4,16,7], index: 1, kind: output, shape index: {}]  }
   0x1   :  { %v44_v0 = vld [vmem:[%s329_s0] sm:$0xff]  ;;  %v46_v1 = vld [vmem:[%s329_s0 + $0x8] sm:$0xff]  ;;  %v48_v2 = vld [vmem:[%s329_s0 + $0x10] sm:$0xff]  ;;  %v65_v10 = vrot.slane %v64_v9, 1  ;;  %v79_v14 = vrot.slane %v78_v12, 1 }
   0x2   :  { %45 = vst [vmem:[#allocation0 + $0x8] sm:$0xff] %v44_v0  ;;  %47 = vst [vmem:[#allocation0 + $0x18] sm:$0xff] %v46_v1  ;;  %v50_v4 = vld [vmem:[%s329_s0 + $0x18] sm:$0xff]  ;;  %v52_v5 = vld [vmem:[%s329_s0 + $0x20] sm:$0xff]  ;;  %v72_v11 = vshrl.u32 %v71_v3, 7 }
   0x3   :  { %49 = vst [vmem:[#allocation0 + $0x28] sm:$0xff] %v48_v2  ;;  %v54_v6 = vld [vmem:[%s329_s0 + $0x28] sm:$0xff]  ;;  %51 = vst [vmem:[#allocation0 + $0x38] sm:$0xff] %v50_v4  ;;  %v56_v7 = vld [vmem:[%s329_s0 + $0x30] sm:$0xff] }
   0x4   :  { %53 = vst [vmem:[#allocation0 + $0x48] sm:$0xff] %v52_v5  ;;  %55 = vst [vmem:[#allocation0 + $0x58] sm:$0xff] %v54_v6  ;;  %v58_v8 = vld [vmem:[%s329_s0 + $0x38] sm:$0xff]  ;;  %v92_v13 = vld [vmem:[#allocation0 + $0x27] ss:$-1 sm:$0xff]  ;;  %vm73_vm0 = vcmp.lt.s32.totalorder %v72_v11, 7 }
   0x5   :  { %57 = vst [vmem:[#allocation0 + $0x68] sm:$0xff] %v56_v7  ;;  %59 = vst [vmem:[#allocation0 + $0x78] sm:$0xff] %v58_v8  ;;  %v93_v15 = vrot.slane %v92_v13, 1  ;;  %v106_v16 = vld [vmem:[#allocation0 + $0x37] ss:$-1 sm:$0xff] }
   0x6   :  { %66 = vst [vmem:[#allocation1] sm:$0xff] %v65_v10  ;;  %v107_v17 = vrot.slane %v106_v16, 1  ;;  %v120_v18 = vld [vmem:[#allocation0 + $0x47] ss:$-1 sm:$0xff]  ;;  %v134_v19 = vld [vmem:[#allocation0 + $0x57] ss:$-1 sm:$0xff] }
   0x7   :  { %80 = vst [vmem:[#allocation1 + $0x8] sm:$0xff] %v79_v14  ;;  %94 = vst [vmem:[#allocation1 + $0x10] sm:$0xff] %v93_v15  ;;  %v121_v20 = vrot.slane %v120_v18, 1  ;;  %v135_v21 = vrot.slane %v134_v19, 1  ;;  %v148_v22 = vld [vmem:[#allocation0 + $0x67] ss:$-1 sm:$0xff] }
   0x8   :  { %v162_v23 = vld [vmem:[#allocation0 + $0x77] ss:$-1 sm:$0xff]  ;;  %108 = vst [vmem:[#allocation1 + $0x18] sm:$0xff] %v107_v17  ;;  %v149_v24 = vrot.slane %v148_v22, 1 }
   0x9   :  { %v163_v25 = vrot.slane %v162_v23, 1  ;;  %v69_v26 = vld [vmem:[#allocation0 + $0xf] ss:$-1 sm:$0xff]  ;;  %v83_v27 = vld [vmem:[#allocation0 + $0x1f] ss:$-1 sm:$0xff]  ;;  %122 = vst [vmem:[#allocation1 + $0x20] sm:$0xff] %v121_v20 }
   0xa   :  { %v97_v28 = vld [vmem:[#allocation0 + $0x2f] ss:$-1 sm:$0xff]  ;;  %136 = vst [vmem:[#allocation1 + $0x28] sm:$0xff] %v135_v21  ;;  %v70_v29 = vrot.slane %v69_v26, 1  ;;  %v84_v30 = vrot.slane %v83_v27, 1  ;;  %150 = vst [vmem:[#allocation1 + $0x30] sm:$0xff] %v149_v24 }
   0xb   :  { %v98_v31 = vrot.slane %v97_v28, 1  ;;  %v111_v32 = vld [vmem:[#allocation0 + $0x3f] ss:$-1 sm:$0xff]  ;;  %164 = vst [vmem:[#allocation1 + $0x38] sm:$0xff] %v163_v25  ;;  %v125_v34 = vld [vmem:[#allocation0 + $0x4f] ss:$-1 sm:$0xff] }
   0xc   :  { %v112_v33 = vrot.slane %v111_v32, 1  ;;  %v139_v35 = vld [vmem:[#allocation0 + $0x5f] ss:$-1 sm:$0xff]  ;;  %74 = vst.msk [vmem:[#allocation1] sm:$0xff] %vm73_vm0, %v70_v29  ;;  %88 = vst.msk [vmem:[#allocation1 + $0x8] sm:$0xff] %vm73_vm0, %v84_v30  ;;  %v126_v36 = vrot.slane %v125_v34, 1 }
   0xd   :  { %102 = vst.msk [vmem:[#allocation1 + $0x10] sm:$0xff] %vm73_vm0, %v98_v31  ;;  %v140_v37 = vrot.slane %v139_v35, 1  ;;  %v153_v38 = vld [vmem:[#allocation0 + $0x6f] ss:$-1 sm:$0xff]  ;;  %v167_v39 = vld [vmem:[#allocation0 + $0x7f] ss:$-1 sm:$0xff] }
   0xe   :  { %116 = vst.msk [vmem:[#allocation1 + $0x18] sm:$0xff] %vm73_vm0, %v112_v33  ;;  %v154_v40 = vrot.slane %v153_v38, 1  ;;  %v168_v41 = vrot.slane %v167_v39, 1  ;;  %130 = vst.msk [vmem:[#allocation1 + $0x20] sm:$0xff] %vm73_vm0, %v126_v36 }
   0xf   :  { %144 = vst.msk [vmem:[#allocation1 + $0x28] sm:$0xff] %vm73_vm0, %v140_v37 }
  0x10   :  { %158 = vst.msk [vmem:[#allocation1 + $0x30] sm:$0xff] %vm73_vm0, %v154_v40  ;;  %172 = vst.msk [vmem:[#allocation1 + $0x38] sm:$0xff] %vm73_vm0, %v168_v41 }
  0x13   :  { %v214_v42 = vld [vmem:[#allocation1] sm:$0xff]  ;;  %v216_v43 = vld [vmem:[#allocation1 + $0x8] sm:$0xff] }
  0x14   :  { %v218_v44 = vld [vmem:[#allocation1 + $0x10] sm:$0xff]  ;;  %215 = vst [vmem:[%s330_s1] sm:$0xff] %v214_v42  ;;  %217 = vst [vmem:[%s330_s1 + $0x8] sm:$0xff] %v216_v43 }
  0x15   :  { %219 = vst [vmem:[%s330_s1 + $0x10] sm:$0xff] %v218_v44  ;;  %v220_v45 = vld [vmem:[#allocation1 + $0x18] sm:$0xff]  ;;  %v222_v46 = vld [vmem:[#allocation1 + $0x20] sm:$0xff] }
  0x16   :  { %221 = vst [vmem:[%s330_s1 + $0x18] sm:$0xff] %v220_v45  ;;  %v224_v47 = vld [vmem:[#allocation1 + $0x28] sm:$0xff]  ;;  %223 = vst [vmem:[%s330_s1 + $0x20] sm:$0xff] %v222_v46 }
  0x17   :  { %225 = vst [vmem:[%s330_s1 + $0x28] sm:$0xff] %v224_v47  ;;  %v226_v48 = vld [vmem:[#allocation1 + $0x30] sm:$0xff]  ;;  %v228_v49 = vld [vmem:[#allocation1 + $0x38] sm:$0xff] }
  0x18   :  { %227 = vst [vmem:[%s330_s1 + $0x30] sm:$0xff] %v226_v48  ;;  %229 = vst [vmem:[%s330_s1 + $0x38] sm:$0xff] %v228_v49 }

</bundles_post_ra>
